<compile_context>
chip_gen: v7x
topology: tpu7x:2x2x1
jax: 0.10.0
libtpu: 0.0.40
codegen_flags: <defaults>
</compile_context>

<pallas_src>
import jax
import jax.numpy as jnp
from jax.experimental import pallas as pl
from jax.experimental.pallas import tpu as pltpu


_LANES = 128  # lane width of the lane-dense partial-sum output block


def _tv_channel_kernel(x_ref, o_ref):
    """TV partial sum of one channel block.

    x_ref: (1, H, W) block (one channel) resident in VMEM.
    o_ref: (1, 1, 128) f32 partial-sum block (scalar splatted across lanes).
    """
    _, h, w = x_ref.shape
    x = x_ref[...]

    # v6e/v7x: keep bf16 math on the VPU; everything else computes in f32.
    if x.dtype != jnp.bfloat16:
        x = x.astype(jnp.float32)
    eps = jnp.asarray(1e-6, x.dtype)

    partial = jnp.float32(0.0)
    if w > 1:
        # Lane-axis neighbour difference (one lane realign, then pure VPU).
        dw = jnp.abs(x[:, :, 1:] - x[:, :, :-1] + eps)
        partial = partial + jnp.sum(dw.astype(jnp.float32))
    if h > 1:
        # Sublane-axis neighbour difference (sublane-offset loads are cheap).
        dh = jnp.abs(x[:, 1:, :] - x[:, :-1, :] + eps)
        partial = partial + jnp.sum(dh.astype(jnp.float32))

    # Lane-dense partial-sum block: full (1, 1, 128) unmasked store.
    o_ref[...] = jnp.zeros(o_ref.shape, jnp.float32) + partial


@jax.jit
def total_variation(adv_patch: jax.Array) -> jax.Array:
    """Pallas TPU implementation of TotalVariation.forward. Returns a scalar."""
    c, h, w = adv_patch.shape
    numel = c * h * w

    # Per-step VMEM estimate: double-buffered input block + f32 temporaries of
    # the fused diff+reduce.  Only raise the scoped-VMEM limit when needed so
    # the common (small-patch) path is identical to the default configuration.
    block_bytes = h * w * adv_patch.dtype.itemsize
    est_vmem = 2 * block_bytes + 6 * h * w * 4 + (1 << 20)
    compiler_kwargs = {"dimension_semantics": ("parallel",)}
    if est_vmem > 24 * 1024 * 1024:
        # TODO(synk): for single channels that do not fit in VMEM at all, add a
        # second row-tile grid axis with a 1-row halo instead of only raising
        # the limit (cap chosen to stay within v7x's 64 MiB physical VMEM).
        compiler_kwargs["vmem_limit_bytes"] = min(int(est_vmem), 64 * 1024 * 1024)

    partials = pl.pallas_call(
        _tv_channel_kernel,
        grid=(c,),
        in_specs=[pl.BlockSpec((1, h, w), lambda i: (i, 0, 0))],
        out_specs=pl.BlockSpec((1, 1, _LANES), lambda i: (i, 0, 0)),
        out_shape=jax.ShapeDtypeStruct((c, 1, _LANES), jnp.float32),
        compiler_params=pltpu.CompilerParams(**compiler_kwargs),
    )(adv_patch)

    # Tiny epilogue: reduce the C per-channel partials and normalise.
    return jnp.sum(partials[:, 0, 0]) / jnp.float32(numel)


def _reference(adv_patch: jax.Array) -> jax.Array:
    x = adv_patch.astype(jnp.float32)
    tv1 = jnp.sum(jnp.abs(x[:, :, 1:] - x[:, :, :-1] + 1e-6))
    tv2 = jnp.sum(jnp.abs(x[:, 1:, :] - x[:, :-1, :] + 1e-6))
    return (tv1 + tv2) / x.size


if __name__ == "__main__":
    key = jax.random.PRNGKey(0)
    # Patch shaped like the PyTorch module expects: (C, H, W)
    adv_patch = jax.random.uniform(key, (3, 16, 16), dtype=jnp.float32)

    tv = total_variation(adv_patch)
    jax.block_until_ready(tv)

    ref = _reference(adv_patch)
    assert jnp.allclose(tv, ref, rtol=1e-5, atol=1e-6), (tv, ref)

    print("KERNEL_OK")
</pallas_src>

<mosaic_0001>
module attributes {stable_mosaic.version = 11 : i64} {
  func.func @_tv_channel_kernel(%arg0: i32, %arg1: memref<1x16x16xf32, #tpu.memory_space<vmem>>, %arg2: memref<1x1x128xf32, #tpu.memory_space<vmem>>) attributes {dimension_semantics = [#tpu.dimension_semantics<parallel>], iteration_bounds = array<i64: 3>, scalar_prefetch = 0 : i64, scratch_operands = 0 : i64, tpu.core_type = #tpu.core_type<tc>, window_params = [{transform_indices = @transform_0, window_bounds = array<i64: 1, 16, 16>}, {transform_indices = @transform_1, window_bounds = array<i64: 1, 1, 128>}]} {
    %c0 = arith.constant 0 : index
    %c0_0 = arith.constant 0 : index
    %c0_1 = arith.constant 0 : index
    %0 = vector.load %arg1[%c0, %c0_0, %c0_1] : memref<1x16x16xf32, #tpu.memory_space<vmem>>, vector<1x16x16xf32>
    %1 = vector.extract_strided_slice %0 {offsets = [0, 0, 1], sizes = [1, 16, 15], strides = [1, 1, 1]} : vector<1x16x16xf32> to vector<1x16x15xf32>
    %2 = vector.extract_strided_slice %0 {offsets = [0, 0, 0], sizes = [1, 16, 15], strides = [1, 1, 1]} : vector<1x16x16xf32> to vector<1x16x15xf32>
    %3 = arith.subf %1, %2 : vector<1x16x15xf32>
    %cst = arith.constant 9.99999997E-7 : f32
    %4 = vector.broadcast %cst : f32 to vector<1x16x15xf32>
    %5 = arith.addf %3, %4 : vector<1x16x15xf32>
    %6 = math.absf %5 : vector<1x16x15xf32>
    %7 = vector.shape_cast %6 : vector<1x16x15xf32> to vector<1x1x16x15xf32>
    %cst_2 = arith.constant dense<0.000000e+00> : vector<1xf32>
    %8 = vector.multi_reduction <add>, %7, %cst_2 [1, 2, 3] : vector<1x1x16x15xf32> to vector<1xf32>
    %9 = vector.shape_cast %8 : vector<1xf32> to vector<1x1x1x1xf32>
    %10 = vector.extract %9[0, 0, 0, 0] : f32 from vector<1x1x1x1xf32>
    %cst_3 = arith.constant 0.000000e+00 : f32
    %11 = arith.addf %cst_3, %10 : f32
    %12 = vector.extract_strided_slice %0 {offsets = [0, 1, 0], sizes = [1, 15, 16], strides = [1, 1, 1]} : vector<1x16x16xf32> to vector<1x15x16xf32>
    %13 = vector.extract_strided_slice %0 {offsets = [0, 0, 0], sizes = [1, 15, 16], strides = [1, 1, 1]} : vector<1x16x16xf32> to vector<1x15x16xf32>
    %14 = arith.subf %12, %13 : vector<1x15x16xf32>
    %cst_4 = arith.constant 9.99999997E-7 : f32
    %15 = vector.broadcast %cst_4 : f32 to vector<1x15x16xf32>
    %16 = arith.addf %14, %15 : vector<1x15x16xf32>
    %17 = math.absf %16 : vector<1x15x16xf32>
    %18 = vector.shape_cast %17 : vector<1x15x16xf32> to vector<1x1x15x16xf32>
    %cst_5 = arith.constant dense<0.000000e+00> : vector<1xf32>
    %19 = vector.multi_reduction <add>, %18, %cst_5 [1, 2, 3] : vector<1x1x15x16xf32> to vector<1xf32>
    %20 = vector.shape_cast %19 : vector<1xf32> to vector<1x1x1x1xf32>
    %21 = vector.extract %20[0, 0, 0, 0] : f32 from vector<1x1x1x1xf32>
    %22 = arith.addf %11, %21 : f32
    %cst_6 = arith.constant 0.000000e+00 : f32
    %23 = vector.broadcast %cst_6 : f32 to vector<1x1x128xf32>
    %24 = vector.broadcast %22 : f32 to vector<1x1x128xf32>
    %25 = arith.addf %23, %24 : vector<1x1x128xf32>
    %c0_7 = arith.constant 0 : index
    %c0_8 = arith.constant 0 : index
    %c0_9 = arith.constant 0 : index
    %26 = vector.load %arg2[%c0_7, %c0_8, %c0_9] : memref<1x1x128xf32, #tpu.memory_space<vmem>>, vector<1x1x128xf32>
    tpu.vector_store %arg2[%c0_7, %c0_8, %c0_9], %25 {strides = array<i32>} : memref<1x1x128xf32, #tpu.memory_space<vmem>>, vector<1x1x128xf32>,
    return
  }
  func.func @transform_0(%arg0: i32) -> (i32, i32, i32) {
    %c0_i32 = arith.constant 0 : i32
    %c0_i32_0 = arith.constant 0 : i32
    %c0_i32_1 = arith.constant 0 : i32
    return %arg0, %c0_i32, %c0_i32_0 : i32, i32, i32
  }
  func.func @transform_1(%arg0: i32) -> (i32, i32, i32) {
    %c0_i32 = arith.constant 0 : i32
    %c0_i32_0 = arith.constant 0 : i32
    %c0_i32_1 = arith.constant 0 : i32
    return %arg0, %c0_i32, %c0_i32_0 : i32, i32, i32
  }
}

</mosaic_0001>

<bundles_post_ra>
// kernel: total_variation.1
= control target key start
LH: loop header
LB: loop body
LE: loop exit
PB: predicated region body
PF: predicated region fallthrough
CT: control target
= control target key end

     0   :  { %6 = vsyncpa [#allocation3], 0  ;;  %s515_s0 = inlined_call_operand.hbm [shape: f32[3,16,16], index: 0, kind: input, shape index: {}]   ;;  %s516_s1 = inlined_call_operand.vmem [shape: f32[3,1,128], index: 1, kind: output, shape index: {}]  }
   0x1   :  { %8 = vsyncpa [#allocation3 + $0x1], 0  ;;  %s407_s6 = smov 0   ;;  %s409_s7 = smov 0  }
   0x2   :  { %s411_s8 = smov 0   ;;  %s413_s9 = smov 0  }
   0x3 LB: > { %s426_s10 = sadd.s32 4294967295, %s390_s9   ;;  %s429_s11 = sadd.s32 1, %s390_s9   ;;  %s390_s9 = sphi %s413_s9, %s523_s9   ;;  %s386_s8 = sphi %s411_s8, %s522_s8   ;;  %s382_s7 = sphi %s409_s7, %s521_s7   ;;  %s378_s6 = sphi %s407_s6, %s520_s6  }
   0x4   : > { %s18_s12 = ssub.s32 %s390_s9, %s429_s11  ;;  %s21_s13 = sadd.s32 1, %s386_s8 }
   0x5   : > { %p19_p0 = scmp.eq.s32.totalorder %s18_s12, 0  ;;  %p28_p1 = scmp.ne.s32.totalorder %s386_s8, %s382_s7 }
   0x6   : > { %p29_p2 = scmp.eq.s32.totalorder %s390_s9, 0  ;;  %p34_p3 = scmp.ne.s32.totalorder %s382_s7, %s378_s6 }
   0x7   : > { %s439_s14 = scalar_select %p19_p0, %s386_s8, %s21_s13  }
   0x8   : > { %p30_p4 = por %p29_p2, %p28_p1  ;;  %p35_p5 = scmp.eq.s32.totalorder %s426_s10, 0 }
   0x9   : > { %p289_p6 = scmp.lt.s32.totalorder %s390_s9, 3  ;;  %s84_s16 = sand.u32 1, %s386_s8  }
   0xa   : > { %p443_p7 = por %p35_p5, %p34_p3  ;;  %s271_s17 = sshll.u32 %s84_s16, 4 }
   0xb   : > { %s278_s18 = sshll.u32 %s390_s9, 8  ;;  %s88_s22 = scalar_lea.vmem [#allocation2], %s271_s17 }
   0xc   : > { %s452_s21 = scalar_lea.hbm %s515_s0, %s278_s18  ;;  %s95_s23 = sshll.u32 %s88_s22, 4  ;;  %s454_s23 = int_to_ptr.vmem [resolvable:$true] %s95_s23 }
   0xd   : > { %p456_p8 = pnand %p289_p6, %p30_p4  ;;  %s461_s25 = scalar_lea.sflag [#allocation3], %s84_s16 }
   0xe   : > { %s326_s26 = scalar_lea.hbm %s452_s21, 256  ;;  %s331_s29 = scalar_lea.hbm %s515_s0, 768 }
   0xf   : > { %p327_p10 = scmp.ne.s32.totalorder %s452_s21, %s326_s26  ;;  %p328_p11 = pneg %p456_p8 }
  0x10   : > { %p332_p0 = scmp.lt.u32.totalorder %s452_s21, %s515_s0  ;;  %p333_p1 = scmp.lt.u32.totalorder %s331_s29, %s326_s26 }
  0x11   : > { %p329_p12 = pnand %p328_p11, %p327_p10  ;;  %p335_p3 = scmp.lt.u32.totalorder %s326_s26, %s452_s21 }
  0x12   : > { %p334_p2 = por %p333_p1, %p332_p0 }
  0x13   : > { %p330_p13 = pneg %p329_p12 }
  0x14   : > { %p336_p4 = por %p335_p3, %p334_p2 }
  0x16   : > { %p337_p5 = pnand %p336_p4, %p330_p13 }
  0x18   : > { %340 = shalt.err (!%p337_p5)
}
  0x19   : > { %s341_s3 = scalar_lea.vmem %s454_s23, 256  ;;  %s392_s4 = smov [#allocation2]  }
  0x1a   : > { %p342_p6 = scmp.ne.s32.totalorder %s454_s23, %s341_s3  ;;  %s346_s5 = sshll.u32 %s392_s4, 4  ;;  %s347_s5 = int_to_ptr.vmem [resolvable:$false] %s346_s5 }
  0x1b   : > { %s348_s6 = scalar_lea.vmem %s347_s5, 512  ;;  %p349_p9 = scmp.lt.s32.totalorder %s454_s23, %s347_s5 }
  0x1c   : > { %p344_p10 = pnand %p342_p6, %p328_p11  ;;  %p350_p0 = scmp.lt.s32.totalorder %s348_s6, %s341_s3 }
  0x1e   : > { %p345_p12 = pneg %p344_p10  ;;  %p351_p1 = por %p350_p0, %p349_p9 }
  0x20   : > { %p352_p2 = pnand %p351_p1, %p345_p12 }
  0x22   : > { %355 = shalt.err (!%p352_p2)
}
  0x23   : > { %s393_s12 = smov 128   ;;  %s394_s13 = smov 8  }
  0x24   : > { %288 = dma.hbm_to_vmem [thread:$0]  (!%p456_p8), %s452_s21, 256, %s454_s23, %s461_s25, %s393_s12, %s393_s12, %s394_s13  }
  0x25   : > { %p103_p11 = scmp.lt.s32.totalorder %s390_s9, 4  ;;  %p519_p13 = scmp.ge.s32.totalorder %s390_s9, 1 }
  0x27   : > { %p104_p3 = pnand %p519_p13, %p103_p11 }
  0x28   : > { %s109_s16 = sand.u32 (!%p104_p3), 1, %s382_s7  }
  0x29   : > { %107 = sbr.rel (%p104_p3) target bundleno = 502 (0x1f6), region = 24  ;;  %s275_s17 = sshll.u32 (!%p104_p3), %s109_s16, 4 }
  0x2a   : > { %s110_s18 = scalar_lea.sflag (!%p104_p3), [#allocation3], %s109_s16  ;;  %s113_s19 = scalar_lea.vmem (!%p104_p3), [#allocation2], %s275_s17 }
  0x30   : > { %373 = dma.done.wait (%p443_p7), %s110_s18, 256  }
  0x31   : > { %375 = vsyncadd (%p443_p7), %s110_s18, 4294967040  ;;  %v133_v0 = vld [vmem:[%s113_s19] sm:$0xff]  ;;  %s395_s20 = smov 1   ;;  %v134_v1 = vld [vmem:[%s113_s19 + $0x8] sm:$0xff]  ;;  %s396_s9 = smov 127   ;;  %vm171_vm0 = vcmask 1040384  }
  0x32   : > { %137 = vrot.lane.b32.xlu0 %v133_v0, %s395_s20  ;;  %v172_v10 = vrot.slane %v133_v0, 7  ;;  %v173_v11 = vrot.slane %v134_v1, 7  ;;  %vm185_vm1 = vcmask 1046528   ;;  %vm191_vm2 = vcmask 130048   ;;  %p130_p7 = scmp.lt.s32.totalorder %s426_s10, 2 }
  0x33   : > { %vm193_vm3 = vcmask 129024   ;;  %vm157_vm4 = vcmask 121856  }
  0x34   : > { %v174_v12 = vsel %vm171_vm0, %v172_v10, %v173_v11  ;;  %v177_v13 = vsub.f32 %v133_v0, %v172_v10  ;;  %s525_s10 = smov (!%p130_p7, %s426_s10), 2 }
  0x35   : > { %v178_v14 = vsub.f32 %v134_v1, %v174_v12  ;;  %s132_s24 = scalar_lea.vmem %s516_s1, %s525_s10 }
  0x36   : > { %139 = vrot.lane.b32.xlu0 %v134_v1, %s395_s20  ;;  %v179_v15 = vadd.f32 1e-06, %v177_v13 }
  0x37   : > { %v180_v16 = vadd.f32 1e-06, %v178_v14 }
  0x38   : > { %v181_v17 = vand.u32 2147483647, %v179_v15 }
  0x39   : > { %v182_v18 = vand.u32 2147483647, %v180_v16 }
  0x3a   : > { %v186_v19 = vrot.slane %v181_v17, 1 }
  0x3b   : > { %v187_v20 = vrot.slane %v182_v18, 1 }
  0x3d   : > { %v188_v21 = vsel %vm185_vm1, %v186_v19, %v187_v20  ;;  %v194_v23 = vsel %vm193_vm3, %v187_v20, 0.0 }
  0x3e   : > { %v192_v22 = vsel %vm191_vm2, %v188_v21, 0.0 }
  0x3f   : > { %v195_v24 = vadd.f32 %v194_v23, %v192_v22 }
  0xa4   : > { %v138_v2 = vpop.permute.xlu0 %137 }
  0xa5   : > { %v143_v3 = vsub.f32 %v133_v0, %v138_v2 }
  0xa7   : > { %v145_v4 = vadd.f32 1e-06, %v143_v3 }
  0xa8   : > { %v140_v5 = vpop.permute.xlu0 %139 }
  0xa9   : > { %v144_v6 = vsub.f32 %v134_v1, %v140_v5  ;;  %v147_v7 = vand.u32 2147483647, %v145_v4 }
  0xab   : > { %v146_v8 = vadd.f32 1e-06, %v144_v6  ;;  %151 = vrot.lane.b32.xlu1 %v147_v7, %s396_s9 }
  0xad   : > { %v148_v9 = vand.u32 2147483647, %v146_v8 }
  0xaf   : > { %153 = vrot.lane.b32.xlu1 %v148_v9, %s396_s9 }
  0xd3   : > { %196 = vadd.xlane.f32.xlu1 %v195_v24 }
 0x11d   : > { %v152_v25 = vpop.permute.xlu1 %151 }
 0x11e   : > { %v158_v27 = vsel %vm157_vm4, %v152_v25, 0.0 }
 0x121   : > { %v154_v26 = vpop.permute.xlu1 %153 }
 0x122   : > { %v159_v28 = vsel %vm157_vm4, %v154_v26, 0.0 }
 0x123   : > { %v160_v29 = vadd.f32 %v159_v28, %v158_v27 }
 0x125   : > { %161 = vadd.xlane.f32.xlu0 %v160_v29 }
 0x160   : > { %v197_v30 = vpop.xlane.xlu1 %196 }
 0x161   : > { %v198_v31 = vrot.slane %v197_v30, 4 }
 0x163   : > { %v199_v32 = vadd.f32 %v198_v31, %v197_v30 }
 0x165   : > { %v200_v33 = vrot.slane %v199_v32, 2 }
 0x167   : > { %v201_v37 = vadd.f32 %v200_v33, %v199_v32 }
 0x169   : > { %v202_v40 = vrot.slane %v201_v37, 1 }
 0x16b   : > { %v203_v43 = vadd.f32 %v202_v40, %v201_v37 }
 0x1b2   : > { %v162_v34 = vpop.xlane.xlu0 %161 }
 0x1b3   : > { %v163_v35 = vrot.slane %v162_v34, 4 }
 0x1b5   : > { %v164_v36 = vadd.f32 %v163_v35, %v162_v34 }
 0x1b7   : > { %v165_v38 = vrot.slane %v164_v36, 2 }
 0x1b9   : > { %v166_v39 = vadd.f32 %v165_v38, %v164_v36 }
 0x1bb   : > { %v167_v41 = vrot.slane %v166_v39, 1 }
 0x1bd   : > { %v168_v42 = vadd.f32 %v167_v41, %v166_v39 }
 0x1bf   : > { %279 = vpush %v168_v42 }
 0x1c0   : > { %281 = vpush %v203_v43 }
 0x1f0   : > { %s280_s15 = spop %279 }
 0x1f1   : > { %s282_s21 = spop %281 }
 0x1f2   : > { %s205_s25 = sadd.f32 %s282_s21, %s280_s15 }
 0x1f4   : > { %v206_v44 = vstv %s205_s25 }
 0x1f5   : > { %208 = vst [vmem:[%s132_s24] sm:$0x1] %v206_v44 }
 0x1f6 PF: > { %p11_p8 = scmp.ge.s32.totalorder %s429_s11, 5   ;;  %s520_s6 = smov %s382_s7 }
 0x1f7   : > { %s521_s7 = smov %s386_s8  ;;  %s522_s8 = smov %s439_s14 }
 0x1f8   : > { %s523_s9 = smov %s429_s11  ;;  %13 = sbr.rel (!%p11_p8) target bundleno = 3 (0x3), region = 64 }
 0x1ff   :  { %226 = vsyncpa [#allocation3], 1 }
 0x200   :  { %228 = vsyncpa [#allocation3 + $0x1], 1 }

</bundles_post_ra>
